<compile_context>
chip_gen: v5e
topology: v5e:2x2
jax: 0.10.0
libtpu: 0.0.40
codegen_flags: <defaults>
</compile_context>

<pallas_src>
import functools

import jax
import jax.numpy as jnp
from jax.experimental import pallas as pl
from jax.experimental.pallas import tpu as pltpu

NUM_EXPERTS = 6
NUM_LABELS = 2
HIDDEN = 1024
LANE = 128          # lane-dense fused output width
SUBLANE = 8
TILE_B_MAX = 2048   # fits v5e's 16 MiB scoped-VMEM default with double buffering


def _round_up(x, m):
    return ((x + m - 1) // m) * m


def _fused_moe_head_kernel(cls_ref, w_ref, b_ref, out_ref, *, num_experts, num_labels):
    # cls_ref: (TB, H)     bf16   CLS activations (one batch tile)
    # w_ref:   (H, 128)    bf16   fused weights (gate lanes 0..E-1, expert lanes E..E+E*L-1)
    # b_ref:   (1, 128)    f32    fused biases (same lane layout, padded lanes = 0)
    # out_ref: (TB, 128)   bf16   final logits in lanes 0..L-1, rest zero

    # Single fused bf16 matmul with f32 accumulation on the MXU.
    logits = jnp.dot(cls_ref[...].astype(jnp.bfloat16), w_ref[...],
                     preferred_element_type=jnp.float32)
    logits = logits + b_ref[...]                                    # f32 bias add

    lane = jax.lax.broadcasted_iota(jnp.int32, logits.shape, 1)     # (TB, 128)

    # Hard routing: argmax over gate lanes only (mask expert + padded lanes).
    gate_view = jnp.where(lane < num_experts, logits, -1e30)
    choice = jnp.argmax(gate_view, axis=1, keepdims=True).astype(jnp.int32)  # (TB,1)

    # The chosen expert's label-j column sits at lane num_experts + choice*L + j,
    # unique per row -> a masked cross-lane sum extracts it; place it at lane j.
    off = lane - (num_experts + choice * num_labels)
    out = jnp.zeros_like(logits)
    for j in range(num_labels):           # num_labels == 2: tiny unrolled loop
        col = jnp.sum(jnp.where(off == j, logits, 0.0), axis=1, keepdims=True)
        out = jnp.where(lane == j, col, out)
    out_ref[...] = out.astype(out_ref.dtype)


def hard_moe_classifier_forward(hidden_state, fused_w, fused_b):
    """hidden_state: (B, S, H) f32  ->  logits (B, NUM_LABELS) f32."""
    B, _, H = hidden_state.shape
    # TODO(synk): the DeBERTa-v3-large base model (AutoModel) producing
    # `hidden_state` is not re-implemented; CLS extraction + bf16 cast are one
    # cheap XLA fusion, flagged fusible into the kernel via allow_input_fusion.
    cls = hidden_state[:, 0, :].astype(jnp.bfloat16)                # (B, H) bf16

    # Tile selection: keep >=2 grid steps when possible (v7x megacore), round
    # to the sublane multiple, and cap so VMEM stays under every generation's
    # scoped default without flags.
    tile_b = min(TILE_B_MAX, _round_up(pl.cdiv(B, 2), SUBLANE))
    grid = (pl.cdiv(B, tile_b),)   # partial last block is masked by Pallas

    kernel = functools.partial(
        _fused_moe_head_kernel, num_experts=NUM_EXPERTS, num_labels=NUM_LABELS)

    out = pl.pallas_call(
        kernel,
        out_shape=jax.ShapeDtypeStruct((B, LANE), jnp.bfloat16),
        grid_spec=pltpu.PrefetchScalarGridSpec(
            num_scalar_prefetch=0,
            grid=grid,
            in_specs=[
                pl.BlockSpec((tile_b, H), lambda i: (i, 0)),   # streamed batch tile
                pl.BlockSpec((H, LANE), lambda i: (0, 0)),     # weights VMEM-resident
                pl.BlockSpec((1, LANE), lambda i: (0, 0)),     # bias VMEM-resident
            ],
            out_specs=pl.BlockSpec((tile_b, LANE), lambda i: (i, 0)),
        ),
        compiler_params=pltpu.CompilerParams(
            # Batch tiles are independent -> shard across TensorCores (v7x megacore).
            dimension_semantics=("parallel",),
            # Let XLA fold the CLS slice + bf16 cast producer into operand 0 so
            # the bf16 cls slab need not be materialized in HBM.
            allow_input_fusion=[True, False, False],
        ),
    )(cls, fused_w, fused_b)

    return out[:, :NUM_LABELS].astype(jnp.float32)


def make_params(key):
    """Deterministic synthetic parameters in PyTorch nn.Linear layout (out, in)."""
    kg, kgb, ke, keb = jax.random.split(key, 4)
    scale = 0.02
    gate_w = scale * jax.random.normal(kg, (NUM_EXPERTS, HIDDEN), jnp.float32)
    gate_b = scale * jax.random.normal(kgb, (NUM_EXPERTS,), jnp.float32)
    expert_w = scale * jax.random.normal(ke, (NUM_EXPERTS, NUM_LABELS, HIDDEN), jnp.float32)
    expert_b = scale * jax.random.normal(keb, (NUM_EXPERTS, NUM_LABELS), jnp.float32)
    return gate_w, gate_b, expert_w, expert_b


def fuse_params(gate_w, gate_b, expert_w, expert_b):
    """Pack gate + all experts into one lane-dense (H, 128) slab.

    Lane layout: [0..E-1] gate, [E + e*L + j] expert e label j, rest zero.
    Weights are cast to bf16 (MXU-native); biases stay f32.
    """
    e, l, h = expert_w.shape
    expert_cols = jnp.transpose(expert_w, (2, 0, 1)).reshape(h, e * l)   # (H, E*L)
    real = e + e * l
    fused_w = jnp.concatenate(
        [gate_w.T, expert_cols, jnp.zeros((h, LANE - real), jnp.float32)], axis=1)
    fused_b = jnp.concatenate(
        [gate_b, expert_b.reshape(-1), jnp.zeros((LANE - real,), jnp.float32)])[None, :]
    return fused_w.astype(jnp.bfloat16), fused_b.astype(jnp.float32)


def reference_forward(hidden_state, gate_w, gate_b, expert_w, expert_b):
    """Pure-JAX reference mirroring the PyTorch forward (eval mode), using the
    same matmul recipe as the kernel (bf16 operands, f32 accumulate); the only
    kernel-side deviation left is the final bf16 output rounding."""
    cls = hidden_state[:, 0, :].astype(jnp.bfloat16)
    gate_logits = jnp.dot(cls, gate_w.T.astype(jnp.bfloat16),
                          preferred_element_type=jnp.float32) + gate_b
    choice = jnp.argmax(gate_logits, axis=1)
    out = jnp.zeros((cls.shape[0], NUM_LABELS), jnp.float32)
    for e in range(NUM_EXPERTS):
        out_e = jnp.dot(cls, expert_w[e].T.astype(jnp.bfloat16),
                        preferred_element_type=jnp.float32) + expert_b[e]
        out = jnp.where((choice == e)[:, None], out_e, out)
    return out


if __name__ == "__main__":
    key = jax.random.PRNGKey(0)
    k_hidden, k_hidden2, k_params = jax.random.split(key, 3)

    gate_w, gate_b, expert_w, expert_b = make_params(k_params)
    fused_w, fused_b = fuse_params(gate_w, gate_b, expert_w, expert_b)

    # Tolerance: the kernel stores bf16 logits (rel error <= 2^-9), everything
    # else matches the reference recipe, so rtol=5e-3 / atol=1e-3 is ample.
    ATOL, RTOL = 1e-3, 5e-3

    # Test 1: tiny batch (B=2), single grid step, partial block.
    B, S = 2, 8
    hidden_state = jax.random.normal(k_hidden, (B, S, HIDDEN), jnp.float32)
    out = jax.block_until_ready(
        hard_moe_classifier_forward(hidden_state, fused_w, fused_b))
    ref = reference_forward(hidden_state, gate_w, gate_b, expert_w, expert_b)
    assert out.shape == (B, NUM_LABELS)
    assert jnp.allclose(out, ref, atol=ATOL, rtol=RTOL), (out, ref)

    # Test 2: multi-step grid with a masked partial last block (B=37).
    B2, S2 = 37, 4
    hidden_state2 = jax.random.normal(k_hidden2, (B2, S2, HIDDEN), jnp.float32)
    out2 = jax.block_until_ready(
        hard_moe_classifier_forward(hidden_state2, fused_w, fused_b))
    ref2 = reference_forward(hidden_state2, gate_w, gate_b, expert_w, expert_b)
    assert out2.shape == (B2, NUM_LABELS)
    assert jnp.allclose(out2, ref2, atol=ATOL, rtol=RTOL), (out2, ref2)

    print("KERNEL_OK")
</pallas_src>

<mosaic_0001>
module attributes {stable_mosaic.version = 11 : i64} {
  func.func @_fused_moe_head_kernel(%arg0: i32, %arg1: memref<8x1024xbf16, #tpu.memory_space<vmem>>, %arg2: memref<1024x128xbf16, #tpu.memory_space<vmem>>, %arg3: memref<1x128xf32, #tpu.memory_space<vmem>>, %arg4: memref<8x128xbf16, #tpu.memory_space<vmem>>) attributes {dimension_semantics = [#tpu.dimension_semantics<parallel>], iteration_bounds = array<i64: 1>, scalar_prefetch = 0 : i64, scratch_operands = 0 : i64, tpu.core_type = #tpu.core_type<tc>, window_params = [{transform_indices = @transform_0, window_bounds = array<i64: 8, 1024>}, {pipeline_mode = #tpu.pipeline_mode<synchronous>, transform_indices = @transform_1, window_bounds = array<i64: 1024, 128>}, {pipeline_mode = #tpu.pipeline_mode<synchronous>, transform_indices = @transform_2, window_bounds = array<i64: 1, 128>}, {transform_indices = @transform_3, window_bounds = array<i64: 8, 128>}]} {
    %c0 = arith.constant 0 : index
    %c0_0 = arith.constant 0 : index
    %0 = vector.load %arg1[%c0, %c0_0] : memref<8x1024xbf16, #tpu.memory_space<vmem>>, vector<8x1024xbf16>
    %c0_1 = arith.constant 0 : index
    %c0_2 = arith.constant 0 : index
    %1 = vector.load %arg2[%c0_1, %c0_2] : memref<1024x128xbf16, #tpu.memory_space<vmem>>, vector<1024x128xbf16>
    %cst = arith.constant dense<0.000000e+00> : vector<8x128xf32>
    %2 = tpu.matmul %0, %1, %cst {dimension_numbers = #tpu.dot_dimension_numbers<[1], [0], [0], [1], [0, 0, 1, 1], [], []>} : vector<8x1024xbf16>, vector<1024x128xbf16>, vector<8x128xf32> -> vector<8x128xf32>
    %c0_3 = arith.constant 0 : index
    %c0_4 = arith.constant 0 : index
    %3 = vector.load %arg3[%c0_3, %c0_4] : memref<1x128xf32, #tpu.memory_space<vmem>>, vector<1x128xf32>
    %4 = vector.broadcast %3 : vector<1x128xf32> to vector<8x128xf32>
    %5 = arith.addf %2, %4 : vector<8x128xf32>
    %6 = tpu.iota {dimensions = array<i32: 1>} : vector<8x128xi32>
    %c6_i32 = arith.constant 6 : i32
    %7 = vector.broadcast %c6_i32 : i32 to vector<8x128xi32>
    %8 = arith.cmpi slt, %6, %7 : vector<8x128xi32>
    %cst_5 = arith.constant -1.000000e+30 : f32
    %9 = vector.broadcast %cst_5 : f32 to vector<8x128xf32>
    %10 = arith.select %8, %5, %9 : vector<8x128xi1>, vector<8x128xf32>
    %11 = tpu.reduce_index %10 {axis = 1 : i32, kind = #tpu.reduction_kind<arg_max>} : vector<8x128xf32> -> vector<8xi32>
    %12 = vector.shape_cast %11 : vector<8xi32> to vector<8x1xi32>
    %c2_i32 = arith.constant 2 : i32
    %13 = vector.broadcast %c2_i32 : i32 to vector<8x1xi32>
    %14 = arith.muli %12, %13 : vector<8x1xi32>
    %c6_i32_6 = arith.constant 6 : i32
    %15 = vector.broadcast %c6_i32_6 : i32 to vector<8x1xi32>
    %16 = arith.addi %15, %14 : vector<8x1xi32>
    %17 = vector.broadcast %16 : vector<8x1xi32> to vector<8x128xi32>
    %18 = arith.subi %6, %17 : vector<8x128xi32>
    %cst_7 = arith.constant 0.000000e+00 : f32
    %19 = vector.broadcast %cst_7 : f32 to vector<8x128xf32>
    %c0_i32 = arith.constant 0 : i32
    %20 = vector.broadcast %c0_i32 : i32 to vector<8x128xi32>
    %21 = arith.cmpi eq, %18, %20 : vector<8x128xi32>
    %cst_8 = arith.constant 0.000000e+00 : f32
    %22 = vector.broadcast %cst_8 : f32 to vector<8x128xf32>
    %23 = arith.select %21, %5, %22 : vector<8x128xi1>, vector<8x128xf32>
    %cst_9 = arith.constant dense<0.000000e+00> : vector<8xf32>
    %24 = vector.multi_reduction <add>, %23, %cst_9 [1] : vector<8x128xf32> to vector<8xf32>
    %25 = vector.shape_cast %24 : vector<8xf32> to vector<8x1xf32>
    %c0_i32_10 = arith.constant 0 : i32
    %26 = vector.broadcast %c0_i32_10 : i32 to vector<8x128xi32>
    %27 = arith.cmpi eq, %6, %26 : vector<8x128xi32>
    %28 = vector.shape_cast %25 : vector<8x1xf32> to vector<8x1xf32>
    %29 = vector.broadcast %28 : vector<8x1xf32> to vector<8x128xf32>
    %30 = arith.select %27, %29, %19 : vector<8x128xi1>, vector<8x128xf32>
    %c1_i32 = arith.constant 1 : i32
    %31 = vector.broadcast %c1_i32 : i32 to vector<8x128xi32>
    %32 = arith.cmpi eq, %18, %31 : vector<8x128xi32>
    %cst_11 = arith.constant 0.000000e+00 : f32
    %33 = vector.broadcast %cst_11 : f32 to vector<8x128xf32>
    %34 = arith.select %32, %5, %33 : vector<8x128xi1>, vector<8x128xf32>
    %cst_12 = arith.constant dense<0.000000e+00> : vector<8xf32>
    %35 = vector.multi_reduction <add>, %34, %cst_12 [1] : vector<8x128xf32> to vector<8xf32>
    %36 = vector.shape_cast %35 : vector<8xf32> to vector<8x1xf32>
    %c1_i32_13 = arith.constant 1 : i32
    %37 = vector.broadcast %c1_i32_13 : i32 to vector<8x128xi32>
    %38 = arith.cmpi eq, %6, %37 : vector<8x128xi32>
    %39 = vector.shape_cast %36 : vector<8x1xf32> to vector<8x1xf32>
    %40 = vector.broadcast %39 : vector<8x1xf32> to vector<8x128xf32>
    %41 = arith.select %38, %40, %30 : vector<8x128xi1>, vector<8x128xf32>
    %42 = arith.truncf %41 : vector<8x128xf32> to vector<8x128xbf16>
    %c0_14 = arith.constant 0 : index
    %c0_15 = arith.constant 0 : index
    %43 = vector.load %arg4[%c0_14, %c0_15] : memref<8x128xbf16, #tpu.memory_space<vmem>>, vector<8x128xbf16>
    tpu.vector_store %arg4[%c0_14, %c0_15], %42 {strides = array<i32>} : memref<8x128xbf16, #tpu.memory_space<vmem>>, vector<8x128xbf16>,
    return
  }
  func.func @transform_0(%arg0: i32) -> (i32, i32) {
    %c0_i32 = arith.constant 0 : i32
    %c0_i32_0 = arith.constant 0 : i32
    return %arg0, %c0_i32 : i32, i32
  }
  func.func @transform_1(%arg0: i32) -> (i32, i32) {
    %c0_i32 = arith.constant 0 : i32
    %c0_i32_0 = arith.constant 0 : i32
    %c0_i32_1 = arith.constant 0 : i32
    return %c0_i32, %c0_i32_0 : i32, i32
  }
  func.func @transform_2(%arg0: i32) -> (i32, i32) {
    %c0_i32 = arith.constant 0 : i32
    %c0_i32_0 = arith.constant 0 : i32
    %c0_i32_1 = arith.constant 0 : i32
    return %c0_i32, %c0_i32_0 : i32, i32
  }
  func.func @transform_3(%arg0: i32) -> (i32, i32) {
    %c0_i32 = arith.constant 0 : i32
    %c0_i32_0 = arith.constant 0 : i32
    return %arg0, %c0_i32 : i32, i32
  }
}

</mosaic_0001>

<bundles_post_ra>
// kernel: tpu_custom_call.1
= control target key start
LH: loop header
LB: loop body
LE: loop exit
PB: predicated region body
PF: predicated region fallthrough
CT: control target
= control target key end

     0   :  { %8 = vsyncpa [#allocation3], 0  ;;  %s1215_s0 = inlined_call_operand.hbm [shape: bf16[2,1024], index: 0, kind: input, shape index: {}]   ;;  %s1216_s1 = inlined_call_operand.hbm [shape: bf16[1024,128], index: 1, kind: input, shape index: {}]   ;;  %s1217_s2 = inlined_call_operand.vmem [shape: f32[1,128], index: 2, kind: input, shape index: {}]   ;;  %s1218_s3 = inlined_call_operand.hbm [shape: bf16[2,128], index: 3, kind: output, shape index: {}]  }
   0x1   :  { %9 = vsyncpa [#allocation6], 0 }
   0x2   :  { %10 = vsyncpa [#allocation4], 0 }
   0x3   :  { %14 = vsyncadd [#allocation3], 384  ;;  %s15_s14 = sshll.u32 %s1215_s0, 4  ;;  %s1174_s15 = smov [#allocation2]   ;;  %s16_s14 = int_to_ptr.hbm [resolvable:$true] %s15_s14 }
   0x4   :  { %s17_s16 = sshll.u32 %s1174_s15, 4  ;;  %s28_s19 = sshll.u32 %s1216_s1, 4  ;;  %s18_s16 = int_to_ptr.vmem [resolvable:$true] %s17_s16  ;;  %s29_s19 = int_to_ptr.hbm [resolvable:$true] %s28_s19 }
   0x5   :  { %s1175_s20 = smov 128   ;;  %s1176_s21 = smov 8  }
   0x6   :  { %23 = dma.hbm_to_vmem [thread:$0]  %s16_s14, 128, %s18_s16, [#allocation3], %s1175_s20, %s1175_s20, %s1176_s21  }
   0x7   :  { %s1177_s22 = smov [#allocation5]   ;;  %s1178_s24 = smov 64  }
   0x8   :  { %s30_s23 = sshll.u32 %s1177_s22, 4  ;;  %s1179_s25 = smov 4   ;;  %s31_s23 = int_to_ptr.vmem [resolvable:$true] %s30_s23 }
   0x9   :  { %36 = dma.hbm_to_vmem [thread:$0]  %s29_s19, 8192, %s31_s23, [#allocation6], %s1178_s24, %s1178_s24, %s1179_s25  }
   0xa   :  { %1168 = dma.done.wait [#allocation3], 512  }
   0xb   :  { %1169 = vsyncadd [#allocation3], 4294966784 }
   0xc   :  { %1170 = dma.done.wait [#allocation6], 8192  }
   0xd   :  { %1171 = vsyncadd [#allocation6], 4294959104  ;;  %v1029_v0 = vld [vmem:[#allocation5 + $0x38] sm:$0xff]  ;;  %v1028_v4 = vld [vmem:[#allocation5 + $0x30] sm:$0xff]  ;;  %vm722_vm5 = vcmask 1040384   ;;  %vm726_vm6 = vcmask 1041409  }
   0xe   :  { %v1037_v1 = vld [vmem:[#allocation5 + $0x78] sm:$0xff]  ;;  %594 = vmatpush.bf16.msra.mxu0 %v1029_v0  ;;  %v1036_v5 = vld [vmem:[#allocation5 + $0x70] sm:$0xff]  ;;  %v1027_v8 = vld [vmem:[#allocation5 + $0x28] sm:$0xff]  ;;  %vm730_vm7 = vcmask 1042434   ;;  %vm734_vm8 = vcmask 1043459  }
   0xf   :  { %v1045_v2 = vld [vmem:[#allocation5 + $0xb8] sm:$0xff]  ;;  %607 = vmatpush.bf16.msra.mxu1 %v1037_v1  ;;  %v1044_v6 = vld [vmem:[#allocation5 + $0xb0] sm:$0xff]  ;;  %v1035_v9 = vld [vmem:[#allocation5 + $0x68] sm:$0xff] }
  0x10   :  { %v1053_v3 = vld [vmem:[#allocation5 + $0xf8] sm:$0xff]  ;;  %620 = vmatpush.bf16.msra.mxu2 %v1045_v2  ;;  %v1052_v7 = vld [vmem:[#allocation5 + $0xf0] sm:$0xff]  ;;  %v1043_v10 = vld [vmem:[#allocation5 + $0xa8] sm:$0xff] }
  0x11   :  { %633 = vmatpush.bf16.msra.mxu3 %v1053_v3  ;;  %v1051_v11 = vld [vmem:[#allocation5 + $0xe8] sm:$0xff]  ;;  %v1026_v12 = vld [vmem:[#allocation5 + $0x20] sm:$0xff]  ;;  %v1025_v16 = vld [vmem:[#allocation5 + $0x18] sm:$0xff] }
  0x12   :  { %595 = vmatpush.bf16.msra.mxu0 %v1028_v4  ;;  %v1034_v13 = vld [vmem:[#allocation5 + $0x60] sm:$0xff]  ;;  %v48_v18 = vld [vmem:[#allocation2 + $0x8] sm:$0xff]  ;;  %v1033_v19 = vld [vmem:[#allocation5 + $0x58] sm:$0xff] }
  0x13   :  { %608 = vmatpush.bf16.msra.mxu1 %v1036_v5  ;;  %v1042_v14 = vld [vmem:[#allocation5 + $0xa0] sm:$0xff]  ;;  %v49_v20 = vld [vmem:[#allocation2 + $0x10] sm:$0xff]  ;;  %v50_v21 = vld [vmem:[#allocation2 + $0x18] sm:$0xff]  ;;  %187 = vst [vmem:[#allocation1 + $0x1] ss:$9 sm:$0xff] %v48_v18 }
  0x14   :  { %621 = vmatpush.bf16.msra.mxu2 %v1044_v6  ;;  %v1050_v15 = vld [vmem:[#allocation5 + $0xe0] sm:$0xff]  ;;  %v1041_v22 = vld [vmem:[#allocation5 + $0x98] sm:$0xff]  ;;  %190 = vst [vmem:[#allocation1 + $0x2] ss:$9 sm:$0xff] %v49_v20  ;;  %v1024_v24 = vld [vmem:[#allocation5 + $0x10] sm:$0xff] }
  0x15   :  { %634 = vmatpush.bf16.msra.mxu3 %v1052_v7  ;;  %v47_v17 = vld [vmem:[#allocation2] sm:$0xff]  ;;  %v1049_v23 = vld [vmem:[#allocation5 + $0xd8] sm:$0xff]  ;;  %193 = vst [vmem:[#allocation1 + $0x3] ss:$9 sm:$0xff] %v50_v21  ;;  %v1032_v25 = vld [vmem:[#allocation5 + $0x50] sm:$0xff] }
  0x16   :  { %596 = vmatpush.bf16.msra.mxu0 %v1027_v8  ;;  %184 = vst [vmem:[#allocation1] ss:$9 sm:$0xff] %v47_v17  ;;  %v1040_v26 = vld [vmem:[#allocation5 + $0x90] sm:$0xff]  ;;  %v1023_v28 = vld [vmem:[#allocation5 + $0x8] sm:$0xff]  ;;  %v1022_v32 = vld [vmem:[#allocation5] sm:$0xff] }
  0x17   :  { %609 = vmatpush.bf16.msra.mxu1 %v1035_v9  ;;  %v1048_v27 = vld [vmem:[#allocation5 + $0xd0] sm:$0xff]  ;;  %v1031_v29 = vld [vmem:[#allocation5 + $0x48] sm:$0xff]  ;;  %v1030_v33 = vld [vmem:[#allocation5 + $0x40] sm:$0xff] }
  0x18   :  { %622 = vmatpush.bf16.msra.mxu2 %v1043_v10  ;;  %v1039_v30 = vld [vmem:[#allocation5 + $0x88] sm:$0xff]  ;;  %v1038_v34 = vld [vmem:[#allocation5 + $0x80] sm:$0xff]  ;;  %v1061_v36 = vld [vmem:[#allocation5 + $0x138] sm:$0xff] }
  0x19   :  { %635 = vmatpush.bf16.msra.mxu3 %v1051_v11  ;;  %v1047_v31 = vld [vmem:[#allocation5 + $0xc8] sm:$0xff]  ;;  %v1046_v35 = vld [vmem:[#allocation5 + $0xc0] sm:$0xff]  ;;  %v1069_v37 = vld [vmem:[#allocation5 + $0x178] sm:$0xff] }
  0x1a   :  { %597 = vmatpush.bf16.msra.mxu0 %v1026_v12  ;;  %v1077_v38 = vld [vmem:[#allocation5 + $0x1b8] sm:$0xff]  ;;  %v1060_v40 = vld [vmem:[#allocation5 + $0x130] sm:$0xff]  ;;  %v1059_v48 = vld [vmem:[#allocation5 + $0x128] sm:$0xff] }
  0x1b   :  { %610 = vmatpush.bf16.msra.mxu1 %v1034_v13  ;;  %v1085_v39 = vld [vmem:[#allocation5 + $0x1f8] sm:$0xff]  ;;  %v1068_v43 = vld [vmem:[#allocation5 + $0x170] sm:$0xff]  ;;  %v1067_v49 = vld [vmem:[#allocation5 + $0x168] sm:$0xff] }
  0x1c   :  { %623 = vmatpush.bf16.msra.mxu2 %v1042_v14  ;;  %v1076_v46 = vld [vmem:[#allocation5 + $0x1b0] sm:$0xff]  ;;  %v1075_v50 = vld [vmem:[#allocation5 + $0x1a8] sm:$0xff]  ;;  %v1058_v52 = vld [vmem:[#allocation5 + $0x120] sm:$0xff] }
  0x1d   :  { %636 = vmatpush.bf16.msra.mxu3 %v1050_v15  ;;  %v196_v41 = vld [vmem:[#allocation1 + $0x12] sm:$0xff]  ;;  %v194_v42 = vld [vmem:[#allocation1] sm:$0xff]  ;;  %v195_v45 = vld [vmem:[#allocation1 + $0x9] sm:$0xff] }
  0x1e   :  { %598 = vmatpush.bf16.msra.mxu0 %v1025_v16  ;;  %v197_v44 = vld [vmem:[#allocation1 + $0x1b] sm:$0xff]  ;;  %v1083_v51 = vld [vmem:[#allocation5 + $0x1e8] sm:$0xff]  ;;  %v1066_v53 = vld [vmem:[#allocation5 + $0x160] sm:$0xff] }
  0x1f   :  { %611 = vmatpush.bf16.msra.mxu1 %v1033_v19  ;;  %v1084_v47 = vld [vmem:[#allocation5 + $0x1f0] sm:$0xff]  ;;  %v1074_v54 = vld [vmem:[#allocation5 + $0x1a0] sm:$0xff]  ;;  %v1057_v56 = vld [vmem:[#allocation5 + $0x118] sm:$0xff] }
  0x20   :  { %624 = vmatpush.bf16.msra.mxu2 %v1041_v22  ;;  %v1082_v55 = vld [vmem:[#allocation5 + $0x1e0] sm:$0xff]  ;;  %v1065_v57 = vld [vmem:[#allocation5 + $0x158] sm:$0xff]  ;;  %v1056_v60 = vld [vmem:[#allocation5 + $0x110] sm:$0xff] }
  0x21   :  { %637 = vmatpush.bf16.msra.mxu3 %v1049_v23  ;;  %v1073_v58 = vld [vmem:[#allocation5 + $0x198] sm:$0xff]  ;;  %v1064_v61 = vld [vmem:[#allocation5 + $0x150] sm:$0xff]  ;;  %v1055_v0 = vld [vmem:[#allocation5 + $0x108] sm:$0xff] }
  0x22   :  { %599 = vmatpush.bf16.msra.mxu0 %v1024_v24  ;;  %v1081_v59 = vld [vmem:[#allocation5 + $0x1d8] sm:$0xff]  ;;  %v1072_v62 = vld [vmem:[#allocation5 + $0x190] sm:$0xff]  ;;  %v1063_v1 = vld [vmem:[#allocation5 + $0x148] sm:$0xff] }
  0x23   :  { %612 = vmatpush.bf16.msra.mxu1 %v1032_v25  ;;  %v1080_v63 = vld [vmem:[#allocation5 + $0x1d0] sm:$0xff]  ;;  %v1071_v2 = vld [vmem:[#allocation5 + $0x188] sm:$0xff]  ;;  %v1054_v4 = vld [vmem:[#allocation5 + $0x100] sm:$0xff] }
  0x24   :  { %625 = vmatpush.bf16.msra.mxu2 %v1040_v26  ;;  %v1079_v3 = vld [vmem:[#allocation5 + $0x1c8] sm:$0xff]  ;;  %v1062_v5 = vld [vmem:[#allocation5 + $0x140] sm:$0xff]  ;;  %v201_v11 = vld [vmem:[#allocation1 + $0x3f] sm:$0xff] }
  0x25   :  { %638 = vmatpush.bf16.msra.mxu3 %v1048_v27  ;;  %v1070_v6 = vld [vmem:[#allocation5 + $0x180] sm:$0xff]  ;;  %v200_v10 = vld [vmem:[#allocation1 + $0x36] sm:$0xff]  ;;  %v1095_v18 = vld [vmem:[%s1217_s2] ss:$0 sm:$0xff]  ;;  %v698_v27 = vlaneseq }
  0x26   :  { %600 = vmatpush.bf16.msra.mxu0 %v1023_v28  ;;  %v1078_v7 = vld [vmem:[#allocation5 + $0x1c0] sm:$0xff] }
  0x27   :  { %613 = vmatpush.bf16.msra.mxu1 %v1031_v29  ;;  %v198_v8 = vld [vmem:[#allocation1 + $0x24] sm:$0xff]  ;;  %v199_v9 = vld [vmem:[#allocation1 + $0x2d] sm:$0xff]  ;;  %v699_v29 = vand.u32 127, %v698_v27 }
  0x28   :  { %626 = vmatpush.bf16.msra.mxu2 %v1039_v30 }
  0x29   :  { %639 = vmatpush.bf16.msra.mxu3 %v1047_v31  ;;  %vm700_vm0 = vcmp.lt.s32.totalorder %v699_v29, 6  ;;  %vm711_vm3 = vcmp.eq.s32.totalorder %v699_v29, 0  ;;  %vm717_vm4 = vcmp.eq.s32.totalorder %v699_v29, 1 }
  0x2a   :  { %601 = vmatpush.bf16.msra.mxu0 %v1022_v32 }
  0x2b   :  { %614 = vmatpush.bf16.msra.mxu1 %v1030_v33 }
  0x2c   :  { %627 = vmatpush.bf16.msra.mxu2 %v1038_v34 }
  0x2d   :  { %640 = vmatpush.bf16.msra.mxu3 %v1046_v35  ;;  %602 = vmatmul.bf16.vlgmr.msra.gmra.mxu0 %v194_v42 }
  0x2e   :  { %646 = vmatpush.bf16.msrb.mxu0 %v1061_v36  ;;  %615 = vmatmul.bf16.vlgmr.msra.gmra.mxu1 %v195_v45 }
  0x2f   :  { %659 = vmatpush.bf16.msrb.mxu1 %v1069_v37  ;;  %628 = vmatmul.bf16.vlgmr.msra.gmra.mxu2 %v196_v41 }
  0x30   :  { %672 = vmatpush.bf16.msrb.mxu2 %v1077_v38  ;;  %641 = vmatmul.bf16.vlgmr.msra.gmra.mxu3 %v197_v44 }
  0x31   :  { %685 = vmatpush.bf16.msrb.mxu3 %v1085_v39 }
  0x32   :  { %647 = vmatpush.bf16.msrb.mxu0 %v1060_v40 }
  0x33   :  { %660 = vmatpush.bf16.msrb.mxu1 %v1068_v43 }
  0x34   :  { %673 = vmatpush.bf16.msrb.mxu2 %v1076_v46 }
  0x35   :  { %686 = vmatpush.bf16.msrb.mxu3 %v1084_v47 }
  0x36   :  { %648 = vmatpush.bf16.msrb.mxu0 %v1059_v48 }
  0x37   :  { %661 = vmatpush.bf16.msrb.mxu1 %v1067_v49 }
  0x38   :  { %674 = vmatpush.bf16.msrb.mxu2 %v1075_v50 }
  0x39   :  { %687 = vmatpush.bf16.msrb.mxu3 %v1083_v51 }
  0x3a   :  { %649 = vmatpush.bf16.msrb.mxu0 %v1058_v52 }
  0x3b   :  { %662 = vmatpush.bf16.msrb.mxu1 %v1066_v53 }
  0x3c   :  { %675 = vmatpush.bf16.msrb.mxu2 %v1074_v54 }
  0x3d   :  { %688 = vmatpush.bf16.msrb.mxu3 %v1082_v55 }
  0x3e   :  { %650 = vmatpush.bf16.msrb.mxu0 %v1057_v56 }
  0x3f   :  { %663 = vmatpush.bf16.msrb.mxu1 %v1065_v57 }
  0x40   :  { %676 = vmatpush.bf16.msrb.mxu2 %v1073_v58 }
  0x41   :  { %689 = vmatpush.bf16.msrb.mxu3 %v1081_v59 }
  0x42   :  { %651 = vmatpush.bf16.msrb.mxu0 %v1056_v60 }
  0x43   :  { %664 = vmatpush.bf16.msrb.mxu1 %v1064_v61 }
  0x44   :  { %677 = vmatpush.bf16.msrb.mxu2 %v1072_v62 }
  0x45   :  { %690 = vmatpush.bf16.msrb.mxu3 %v1080_v63 }
  0x46   :  { %652 = vmatpush.bf16.msrb.mxu0 %v1055_v0 }
  0x47   :  { %665 = vmatpush.bf16.msrb.mxu1 %v1063_v1 }
  0x48   :  { %678 = vmatpush.bf16.msrb.mxu2 %v1071_v2 }
  0x49   :  { %691 = vmatpush.bf16.msrb.mxu3 %v1079_v3 }
  0x4a   :  { %653 = vmatpush.bf16.msrb.mxu0 %v1054_v4 }
  0x4b   :  { %666 = vmatpush.bf16.msrb.mxu1 %v1062_v5 }
  0x4c   :  { %679 = vmatpush.bf16.msrb.mxu2 %v1070_v6 }
  0x4d   :  { %692 = vmatpush.bf16.msrb.mxu3 %v1078_v7  ;;  %654 = vmatmul.bf16.vlgmr.msrb.gmra.mxu0 %v198_v8 }
  0x4e   :  { %667 = vmatmul.bf16.vlgmr.msrb.gmra.mxu1 %v199_v9 }
  0x4f   :  { %680 = vmatmul.bf16.vlgmr.msrb.gmra.mxu2 %v200_v10 }
  0x50   :  { %693 = vmatmul.bf16.vlgmr.msrb.gmra.mxu3 %v201_v11 }
  0xaa   :  { %v603_v12 = vpop.f32.mrf.mxu0 }
  0xab   :  { %v616_v13 = vpop.f32.mrf.mxu1  ;;  %v604_v21 = vadd.f32 %v1095_v18, %v603_v12 }
  0xad   :  { %v617_v22 = vadd.f32 %v616_v13, %v604_v21 }
  0xb2   :  { %v629_v14 = vpop.f32.mrf.mxu2  ;;  %v605_v16 = vpop.f32.mrf.mxu0 }
  0xb3   :  { %v642_v15 = vpop.f32.mrf.mxu3  ;;  %v618_v17 = vpop.f32.mrf.mxu1  ;;  %v630_v23 = vadd.f32 %v629_v14, %v617_v22 }
  0xb5   :  { %v643_v24 = vadd.f32 %v642_v15, %v630_v23 }
  0xba   :  { %v631_v19 = vpop.f32.mrf.mxu2 }
  0xbb   :  { %v644_v20 = vpop.f32.mrf.mxu3 }
  0xca   :  { %v655_v25 = vpop.f32.mrf.mxu0 }
  0xcb   :  { %v668_v26 = vpop.f32.mrf.mxu1  ;;  %v656_v28 = vadd.f32 %v655_v25, %v643_v24 }
  0xcd   :  { %v669_v30 = vadd.f32 %v668_v26, %v656_v28 }
  0xd2   :  { %v681_v31 = vpop.f32.mrf.mxu2  ;;  %v657_v34 = vpop.f32.mrf.mxu0 }
  0xd3   :  { %v694_v32 = vpop.f32.mrf.mxu3  ;;  %v682_v33 = vadd.f32 %v681_v31, %v669_v30  ;;  %v670_v35 = vpop.f32.mrf.mxu1 }
  0xd5   :  { %v695_v36 = vadd.f32 %v694_v32, %v682_v33 }
  0xd7   :  { %v701_v37 = vsel %vm700_vm0, %v695_v36, -1e+30 }
  0xd8   :  { %702 = vmax.index.xlane.f32.xlu0 %v701_v37 }
  0xda   :  { %v683_v38 = vpop.f32.mrf.mxu2 }
  0xdb   :  { %v696_v39 = vpop.f32.mrf.mxu3 }
 0x14b   :  { %v703_v40 = vpop.xlane.xlu0 %702 }
 0x14c   :  { %v704_v41 = vmul.u32 2, %v703_v40 }
 0x14e   :  { %v705_v42 = vadd.s32 6, %v704_v41 }
 0x150   :  { %v706_v43 = vsub.s32 %v699_v29, %v705_v42 }
 0x152   :  { %vm713_vm1 = vcmp.eq.s32.totalorder %v706_v43, 1  ;;  %vm707_vm2 = vcmp.eq.s32.totalorder %v706_v43, 0 }
 0x153   :  { %v714_v44 = vsel %vm713_vm1, %v695_v36, 0.0  ;;  %v708_v45 = vsel %vm707_vm2, %v695_v36, 0.0 }
 0x154   :  { %715 = vadd.xlane.f32.xlu1 %v714_v44  ;;  %709 = vadd.xlane.f32.xlu0 %v708_v45 }
 0x1c7   :  { %v716_v46 = vpop.xlane.xlu1 %715  ;;  %v710_v47 = vpop.xlane.xlu0 %709 }
 0x1c8   :  { %v712_v48 = vsel %vm711_vm3, %v710_v47, 0.0 }
 0x1c9   :  { %v718_v49 = vsel %vm717_vm4, %v716_v46, %v712_v48 }
 0x1ca   :  { %v719_v50 = vpack.c.bf16 %v718_v49, %v718_v49 }
 0x1cc   :  { %v721_v51 = vrot.slane %v719_v50, 3 }
 0x1ce   :  { %v725_v52 = vsel %vm722_vm5, %v719_v50, %v721_v51  ;;  %v727_v53 = vsel %vm726_vm6, %v719_v50, %v721_v51  ;;  %v731_v54 = vsel %vm730_vm7, %v719_v50, %v721_v51  ;;  %v735_v55 = vsel %vm734_vm8, %v719_v50, %v721_v51 }
 0x1cf   :  { %v729_v56 = vrot.slane %v727_v53, 1  ;;  %v733_v57 = vrot.slane %v731_v54, 2  ;;  %v737_v58 = vrot.slane %v735_v55, 3  ;;  %742 = vst [vmem:[#allocation7] sm:$0x1] %v725_v52 }
 0x1d1   :  { %743 = vst [vmem:[#allocation7 + $0x1] sm:$0x1] %v729_v56 }
 0x1d2   :  { %744 = vst [vmem:[#allocation7 + $0x2] sm:$0x1] %v733_v57 }
 0x1d3   :  { %745 = vst [vmem:[#allocation7 + $0x3] sm:$0x1] %v737_v58 }
 0x1d4   :  { %749 = vsyncadd [#allocation4], 48  ;;  %s752_s27 = sshll.u32 %s1218_s3, 4  ;;  %s1180_s28 = smov [#allocation7]   ;;  %s753_s27 = int_to_ptr.hbm [resolvable:$true] %s752_s27 }
 0x1d5   :  { %s750_s29 = sshll.u32 %s1180_s28, 4  ;;  %s1181_s30 = smov 16   ;;  %s751_s29 = int_to_ptr.vmem [resolvable:$true] %s750_s29 }
 0x1d6   :  { %s1182_s4 = smov 1  }
 0x1d7   :  { %758 = dma.vmem_to_hbm [thread:$0]  %s751_s29, 16, %s753_s27, [#allocation4], %s1181_s30, %s1181_s30, %s1182_s4  }
 0x1d8   :  { %1172 = dma.done.wait [#allocation4], 64  }
 0x1d9   :  { %1173 = vsyncadd [#allocation4], 4294967232 }
 0x1da   :  { %763 = vsyncpa [#allocation3], 1 }
 0x1db   :  { %764 = vsyncpa [#allocation6], 1 }
 0x1dc   :  { %765 = vsyncpa [#allocation4], 1 }

</bundles_post_ra>
